<compile_context>
chip_gen: v7x
topology: tpu7x:2x2x1
jax: 0.10.0
libtpu: 0.0.40
codegen_flags: <defaults>
</compile_context>

<pallas_src>
import jax
import jax.numpy as jnp
import numpy as np
from jax import lax
from jax.experimental import pallas as pl
from jax.experimental.pallas import tpu as pltpu


LANE = 128          # lane width: output channels padded to a multiple of this
SUBLANE = 8
DEF_TILE_M = 256    # MXU-friendly M tile (v5e 128 / v6e,v7x 256 MXU)
MAX_TILE_K = 512    # K tile (multiple of 128) when the im2col K dim is large


def _round_up(x, m):
  return ((x + m - 1) // m) * m


# ------------------------------ Pallas kernel -------------------------------

def _make_conv_kernel(apply_relu: bool, has_residual: bool):
  """K-tiled GEMM with f32 accumulator + bias (+ residual) (+ ReLU) epilogue."""

  def _epilogue(acc, b_ref, r_ref, o_ref):
    y = acc + b_ref[...]
    if r_ref is not None:
      y = y + r_ref[...]
    if apply_relu:
      y = jnp.maximum(y, 0.0)
    o_ref[...] = y.astype(o_ref.dtype)

  if has_residual:
    def kernel(x_ref, w_ref, b_ref, r_ref, o_ref, acc_ref):
      k = pl.program_id(1)

      @pl.when(k == 0)
      def _():
        acc_ref[...] = jnp.zeros_like(acc_ref)

      acc_ref[...] += jnp.dot(x_ref[...], w_ref[...],
                              preferred_element_type=jnp.float32)

      @pl.when(k == pl.num_programs(1) - 1)
      def _():
        _epilogue(acc_ref[...], b_ref, r_ref, o_ref)
  else:
    def kernel(x_ref, w_ref, b_ref, o_ref, acc_ref):
      k = pl.program_id(1)

      @pl.when(k == 0)
      def _():
        acc_ref[...] = jnp.zeros_like(acc_ref)

      acc_ref[...] += jnp.dot(x_ref[...], w_ref[...],
                              preferred_element_type=jnp.float32)

      @pl.when(k == pl.num_programs(1) - 1)
      def _():
        _epilogue(acc_ref[...], b_ref, None, o_ref)

  return kernel


# ------------------------------ glue helpers --------------------------------

def _im2col(x_nhwc, ksize: int, stride: int, pad: int):
  """Extract conv patches: (N*Ho*Wo, ksize*ksize*Cin), plus (N, Ho, Wo)."""
  n, h, w, c = x_nhwc.shape
  xp = jnp.pad(x_nhwc, ((0, 0), (pad, pad), (pad, pad), (0, 0)))
  ho = (h + 2 * pad - ksize) // stride + 1
  wo = (w + 2 * pad - ksize) // stride + 1
  cols = []
  for dy in range(ksize):
    for dx in range(ksize):
      cols.append(
          xp[:, dy:dy + stride * ho:stride, dx:dx + stride * wo:stride, :])
  patches = jnp.concatenate(cols, axis=-1)             # (N, Ho, Wo, k*k*Cin)
  return patches.reshape(n * ho * wo, ksize * ksize * c), (n, ho, wo)


def conv_bn_pallas(x_nhwc, w_hwio, scale, bias, *, stride=1, pad=1,
                   residual_nhwc=None, relu=False, tile_m=DEF_TILE_M):
  """conv(kxk, no bias) + folded-BN affine (+ residual) (+ relu) via Pallas."""
  ksz, _, c_in, c_out = w_hwio.shape
  kk = ksz * ksz * c_in

  # Fold BN scale into the weights once on the host (rows ordered (dy, dx, ci)).
  w_mat = (w_hwio.reshape(kk, c_out).astype(jnp.float32)
           * scale.reshape(1, c_out).astype(jnp.float32))

  # im2col in bf16 -> halves HBM traffic for the 9x-inflated patch matrix.
  # TODO(synk): a fully in-kernel im2col (K grid axis over shifted windows of
  # the padded NHWC input) would remove the materialized patch matrix entirely.
  patches, (n, ho, wo) = _im2col(x_nhwc.astype(jnp.bfloat16), ksz, stride, pad)
  m = patches.shape[0]

  # Lane-dense output channels.
  c_pad = _round_up(c_out, LANE)

  # K tiling: one full-K block when small, else 128-aligned K tiles (bounded
  # per-step VMEM working set; important for v7x's 64 MiB VMEM).
  if kk <= MAX_TILE_K:
    tile_k, kp = kk, kk
  else:
    tile_k = MAX_TILE_K
    kp = _round_up(kk, tile_k)
  nk = kp // tile_k

  # M tiling: big MXU-friendly tile, but keep >= 2 grid steps so the "parallel"
  # axis can shard across cores and the DMA pipeline has something to overlap.
  while tile_m > SUBLANE and (m + tile_m - 1) // tile_m < 2:
    tile_m //= 2
  tile_m = max(tile_m, SUBLANE)
  mp = _round_up(m, tile_m)

  patches = jnp.pad(patches, ((0, mp - m), (0, kp - kk)))
  w_pad = jnp.pad(w_mat, ((0, kp - kk), (0, c_pad - c_out))).astype(jnp.bfloat16)
  bias2d = jnp.pad(bias.reshape(1, c_out).astype(jnp.float32),
                   ((0, 0), (0, c_pad - c_out)))

  has_res = residual_nhwc is not None
  args = [patches, w_pad, bias2d]
  in_specs = [
      pl.BlockSpec((tile_m, tile_k), lambda i, kq: (i, kq)),
      pl.BlockSpec((tile_k, c_pad), lambda i, kq: (kq, 0)),
      pl.BlockSpec((1, c_pad), lambda i, kq: (0, 0)),
  ]
  if has_res:
    assert residual_nhwc.shape[-1] == c_out and residual_nhwc.size == m * c_out
    res = residual_nhwc.reshape(m, c_out).astype(jnp.float32)
    res = jnp.pad(res, ((0, mp - m), (0, c_pad - c_out)))
    args.append(res)
    in_specs.append(pl.BlockSpec((tile_m, c_pad), lambda i, kq: (i, 0)))

  flops = 2 * mp * kp * c_pad
  bytes_accessed = (mp * kp * 2 + kp * c_pad * 2 + c_pad * 4
                    + mp * c_pad * 4 * (2 if has_res else 1))

  out = pl.pallas_call(
      _make_conv_kernel(relu, has_res),
      out_shape=jax.ShapeDtypeStruct((mp, c_pad), jnp.float32),
      grid_spec=pltpu.PrefetchScalarGridSpec(
          num_scalar_prefetch=0,
          grid=(mp // tile_m, nk),
          in_specs=in_specs,
          out_specs=pl.BlockSpec((tile_m, c_pad), lambda i, kq: (i, 0)),
          scratch_shapes=[pltpu.VMEM((tile_m, c_pad), jnp.float32)]),
      compiler_params=pltpu.CompilerParams(
          dimension_semantics=("parallel", "arbitrary")),
      cost_estimate=pl.CostEstimate(flops=flops, transcendentals=0,
                                    bytes_accessed=bytes_accessed),
  )(*args)
  return out[:m, :c_out].reshape(n, ho, wo, c_out)


# ---------------------------- IdentityBlock fwd -----------------------------

def fold_bn(gamma, beta, mean, var, eps=1e-5):
  scale = gamma / jnp.sqrt(var + eps)
  return scale, beta - mean * scale


def identity_block_forward(x_nchw, params):
  # NCHW -> NHWC once at the block edges; everything inside stays NHWC.
  x = jnp.transpose(x_nchw, (0, 2, 3, 1))
  s1, b1 = fold_bn(*params["bn1"])
  s2, b2 = fold_bn(*params["bn2"])

  # conv1 -> bn1 -> relu            (one fused Pallas call)
  y = conv_bn_pallas(x, params["w1"], s1, b1, relu=True)
  # conv2 -> bn2 -> + x -> relu     (one fused Pallas call)
  out = conv_bn_pallas(y, params["w2"], s2, b2, residual_nhwc=x, relu=True)
  return jnp.transpose(out, (0, 3, 1, 2))


# ------------------------------ pure-JAX ref --------------------------------

def _conv_ref(x_nhwc, w_hwio):
  return lax.conv_general_dilated(
      x_nhwc, w_hwio, window_strides=(1, 1), padding=[(1, 1), (1, 1)],
      dimension_numbers=("NHWC", "HWIO", "NHWC"),
      preferred_element_type=jnp.float32)


def identity_block_ref(x_nchw, params):
  """Reference using the same bf16-operand / f32-accumulate numerics."""
  x = jnp.transpose(x_nchw, (0, 2, 3, 1)).astype(jnp.float32)
  s1, b1 = fold_bn(*params["bn1"])
  s2, b2 = fold_bn(*params["bn2"])
  w1 = (params["w1"].astype(jnp.float32) * s1).astype(jnp.bfloat16)
  w2 = (params["w2"].astype(jnp.float32) * s2).astype(jnp.bfloat16)
  y = jnp.maximum(_conv_ref(x.astype(jnp.bfloat16), w1) + b1, 0.0)
  out = jnp.maximum(_conv_ref(y.astype(jnp.bfloat16), w2) + b2 + x, 0.0)
  return jnp.transpose(out, (0, 3, 1, 2))


# ---------------------------------- main ------------------------------------

def make_params(key, n):
  ks = jax.random.split(key, 4)

  def bn_params(k):
    k1, k2, k3, k4 = jax.random.split(k, 4)
    gamma = 1.0 + 0.1 * jax.random.normal(k1, (n,), jnp.float32)
    beta = 0.05 * jax.random.normal(k2, (n,), jnp.float32)
    mean = 0.1 * jax.random.normal(k3, (n,), jnp.float32)
    var = 1.0 + jnp.abs(0.1 * jax.random.normal(k4, (n,), jnp.float32))
    return (gamma, beta, mean, var)

  return {
      "w1": 0.1 * jax.random.normal(ks[0], (3, 3, n, n), jnp.float32),
      "w2": 0.1 * jax.random.normal(ks[1], (3, 3, n, n), jnp.float32),
      "bn1": bn_params(ks[2]),
      "bn2": bn_params(ks[3]),
  }


if __name__ == "__main__":
  n_channels = 4
  batch, spatial = 2, 16

  key = jax.random.PRNGKey(0)
  kx, kp = jax.random.split(key)
  x = jax.random.normal(kx, (batch, n_channels, spatial, spatial), jnp.float32)
  params = make_params(kp, n_channels)

  out = jax.jit(identity_block_forward)(x, params)
  out = jax.block_until_ready(out)

  ref = jax.block_until_ready(identity_block_ref(x, params))

  assert out.shape == (batch, n_channels, spatial, spatial)
  np.testing.assert_allclose(np.asarray(out), np.asarray(ref),
                             rtol=2e-2, atol=2e-2)
  print("KERNEL_OK")
</pallas_src>

<mosaic_0001>
module attributes {stable_mosaic.version = 11 : i64} {
  func.func @kernel(%arg0: i32, %arg1: i32, %arg2: memref<256x36xbf16, #tpu.memory_space<vmem>>, %arg3: memref<36x128xbf16, #tpu.memory_space<vmem>>, %arg4: memref<1x128xf32, #tpu.memory_space<vmem>>, %arg5: memref<256x128xf32, #tpu.memory_space<vmem>>, %arg6: memref<256x128xf32, #tpu.memory_space<vmem>>) attributes {dimension_semantics = [#tpu.dimension_semantics<parallel>, #tpu.dimension_semantics<arbitrary>], iteration_bounds = array<i64: 2, 1>, scalar_prefetch = 0 : i64, scratch_operands = 1 : i64, tpu.core_type = #tpu.core_type<tc>, window_params = [{transform_indices = @transform_0, window_bounds = array<i64: 256, 36>}, {transform_indices = @transform_1, window_bounds = array<i64: 36, 128>}, {pipeline_mode = #tpu.pipeline_mode<synchronous>, transform_indices = @transform_2, window_bounds = array<i64: 1, 128>}, {transform_indices = @transform_3, window_bounds = array<i64: 256, 128>}]} {
    %c0_i32 = arith.constant 0 : i32
    %0 = arith.cmpi eq, %arg1, %c0_i32 : i32
    %1 = arith.extui %0 : i1 to i32
    %c0_i32_0 = arith.constant 0 : i32
    %2 = arith.cmpi ne, %1, %c0_i32_0 : i32
    scf.if %2 {
      %cst_10 = arith.constant 0.000000e+00 : f32
      %12 = vector.broadcast %cst_10 : f32 to vector<256x128xf32>
      %c0_11 = arith.constant 0 : index
      %c0_12 = arith.constant 0 : index
      %13 = vector.load %arg6[%c0_11, %c0_12] : memref<256x128xf32, #tpu.memory_space<vmem>>, vector<256x128xf32>
      tpu.vector_store %arg6[%c0_11, %c0_12], %12 {strides = array<i32>} : memref<256x128xf32, #tpu.memory_space<vmem>>, vector<256x128xf32>,
    } else {
    }
    %c0 = arith.constant 0 : index
    %c0_1 = arith.constant 0 : index
    %3 = vector.load %arg6[%c0, %c0_1] : memref<256x128xf32, #tpu.memory_space<vmem>>, vector<256x128xf32>
    %c0_2 = arith.constant 0 : index
    %c0_3 = arith.constant 0 : index
    %4 = vector.load %arg2[%c0_2, %c0_3] : memref<256x36xbf16, #tpu.memory_space<vmem>>, vector<256x36xbf16>
    %c0_4 = arith.constant 0 : index
    %c0_5 = arith.constant 0 : index
    %5 = vector.load %arg3[%c0_4, %c0_5] : memref<36x128xbf16, #tpu.memory_space<vmem>>, vector<36x128xbf16>
    %cst = arith.constant dense<0.000000e+00> : vector<256x128xf32>
    %6 = tpu.matmul %4, %5, %cst {dimension_numbers = #tpu.dot_dimension_numbers<[1], [0], [0], [1], [0, 0, 1, 1], [], []>} : vector<256x36xbf16>, vector<36x128xbf16>, vector<256x128xf32> -> vector<256x128xf32>
    %7 = arith.addf %3, %6 : vector<256x128xf32>
    %c0_6 = arith.constant 0 : index
    %c0_7 = arith.constant 0 : index
    %8 = vector.load %arg6[%c0_6, %c0_7] : memref<256x128xf32, #tpu.memory_space<vmem>>, vector<256x128xf32>
    tpu.vector_store %arg6[%c0_6, %c0_7], %7 {strides = array<i32>} : memref<256x128xf32, #tpu.memory_space<vmem>>, vector<256x128xf32>,
    %c0_i32_8 = arith.constant 0 : i32
    %9 = arith.cmpi eq, %arg1, %c0_i32_8 : i32
    %10 = arith.extui %9 : i1 to i32
    %c0_i32_9 = arith.constant 0 : i32
    %11 = arith.cmpi ne, %10, %c0_i32_9 : i32
    scf.if %11 {
      %c0_10 = arith.constant 0 : index
      %c0_11 = arith.constant 0 : index
      %12 = vector.load %arg6[%c0_10, %c0_11] : memref<256x128xf32, #tpu.memory_space<vmem>>, vector<256x128xf32>
      %c0_12 = arith.constant 0 : index
      %c0_13 = arith.constant 0 : index
      %13 = vector.load %arg4[%c0_12, %c0_13] : memref<1x128xf32, #tpu.memory_space<vmem>>, vector<1x128xf32>
      %14 = vector.broadcast %13 : vector<1x128xf32> to vector<256x128xf32>
      %15 = arith.addf %12, %14 : vector<256x128xf32>
      %cst_14 = arith.constant 0.000000e+00 : f32
      %16 = vector.broadcast %cst_14 : f32 to vector<256x128xf32>
      %17 = arith.maximumf %15, %16 : vector<256x128xf32>
      %c0_15 = arith.constant 0 : index
      %c0_16 = arith.constant 0 : index
      %18 = vector.load %arg5[%c0_15, %c0_16] : memref<256x128xf32, #tpu.memory_space<vmem>>, vector<256x128xf32>
      tpu.vector_store %arg5[%c0_15, %c0_16], %17 {strides = array<i32>} : memref<256x128xf32, #tpu.memory_space<vmem>>, vector<256x128xf32>,
    } else {
    }
    return
  }
  func.func @transform_0(%arg0: i32, %arg1: i32) -> (i32, i32) {
    %c0_i32 = arith.constant 0 : i32
    return %arg0, %arg1 : i32, i32
  }
  func.func @transform_1(%arg0: i32, %arg1: i32) -> (i32, i32) {
    %c0_i32 = arith.constant 0 : i32
    %c0_i32_0 = arith.constant 0 : i32
    return %arg1, %c0_i32 : i32, i32
  }
  func.func @transform_2(%arg0: i32, %arg1: i32) -> (i32, i32) {
    %c0_i32 = arith.constant 0 : i32
    %c0_i32_0 = arith.constant 0 : i32
    %c0_i32_1 = arith.constant 0 : i32
    return %c0_i32, %c0_i32_0 : i32, i32
  }
  func.func @transform_3(%arg0: i32, %arg1: i32) -> (i32, i32) {
    %c0_i32 = arith.constant 0 : i32
    %c0_i32_0 = arith.constant 0 : i32
    return %arg0, %c0_i32 : i32, i32
  }
}

module attributes {stable_mosaic.version = 11 : i64} {
  func.func @kernel(%arg0: i32, %arg1: i32, %arg2: memref<256x36xbf16, #tpu.memory_space<vmem>>, %arg3: memref<36x128xbf16, #tpu.memory_space<vmem>>, %arg4: memref<1x128xf32, #tpu.memory_space<vmem>>, %arg5: memref<256x128xf32, #tpu.memory_space<vmem>>, %arg6: memref<256x128xf32, #tpu.memory_space<vmem>>, %arg7: memref<256x128xf32, #tpu.memory_space<vmem>>) attributes {dimension_semantics = [#tpu.dimension_semantics<parallel>, #tpu.dimension_semantics<arbitrary>], iteration_bounds = array<i64: 2, 1>, scalar_prefetch = 0 : i64, scratch_operands = 1 : i64, tpu.core_type = #tpu.core_type<tc>, window_params = [{transform_indices = @transform_0, window_bounds = array<i64: 256, 36>}, {transform_indices = @transform_1, window_bounds = array<i64: 36, 128>}, {pipeline_mode = #tpu.pipeline_mode<synchronous>, transform_indices = @transform_2, window_bounds = array<i64: 1, 128>}, {transform_indices = @transform_3, window_bounds = array<i64: 256, 128>}, {transform_indices = @transform_4, window_bounds = array<i64: 256, 128>}]} {
    %c0_i32 = arith.constant 0 : i32
    %0 = arith.cmpi eq, %arg1, %c0_i32 : i32
    %1 = arith.extui %0 : i1 to i32
    %c0_i32_0 = arith.constant 0 : i32
    %2 = arith.cmpi ne, %1, %c0_i32_0 : i32
    scf.if %2 {
      %cst_10 = arith.constant 0.000000e+00 : f32
      %12 = vector.broadcast %cst_10 : f32 to vector<256x128xf32>
      %c0_11 = arith.constant 0 : index
      %c0_12 = arith.constant 0 : index
      %13 = vector.load %arg7[%c0_11, %c0_12] : memref<256x128xf32, #tpu.memory_space<vmem>>, vector<256x128xf32>
      tpu.vector_store %arg7[%c0_11, %c0_12], %12 {strides = array<i32>} : memref<256x128xf32, #tpu.memory_space<vmem>>, vector<256x128xf32>,
    } else {
    }
    %c0 = arith.constant 0 : index
    %c0_1 = arith.constant 0 : index
    %3 = vector.load %arg7[%c0, %c0_1] : memref<256x128xf32, #tpu.memory_space<vmem>>, vector<256x128xf32>
    %c0_2 = arith.constant 0 : index
    %c0_3 = arith.constant 0 : index
    %4 = vector.load %arg2[%c0_2, %c0_3] : memref<256x36xbf16, #tpu.memory_space<vmem>>, vector<256x36xbf16>
    %c0_4 = arith.constant 0 : index
    %c0_5 = arith.constant 0 : index
    %5 = vector.load %arg3[%c0_4, %c0_5] : memref<36x128xbf16, #tpu.memory_space<vmem>>, vector<36x128xbf16>
    %cst = arith.constant dense<0.000000e+00> : vector<256x128xf32>
    %6 = tpu.matmul %4, %5, %cst {dimension_numbers = #tpu.dot_dimension_numbers<[1], [0], [0], [1], [0, 0, 1, 1], [], []>} : vector<256x36xbf16>, vector<36x128xbf16>, vector<256x128xf32> -> vector<256x128xf32>
    %7 = arith.addf %3, %6 : vector<256x128xf32>
    %c0_6 = arith.constant 0 : index
    %c0_7 = arith.constant 0 : index
    %8 = vector.load %arg7[%c0_6, %c0_7] : memref<256x128xf32, #tpu.memory_space<vmem>>, vector<256x128xf32>
    tpu.vector_store %arg7[%c0_6, %c0_7], %7 {strides = array<i32>} : memref<256x128xf32, #tpu.memory_space<vmem>>, vector<256x128xf32>,
    %c0_i32_8 = arith.constant 0 : i32
    %9 = arith.cmpi eq, %arg1, %c0_i32_8 : i32
    %10 = arith.extui %9 : i1 to i32
    %c0_i32_9 = arith.constant 0 : i32
    %11 = arith.cmpi ne, %10, %c0_i32_9 : i32
    scf.if %11 {
      %c0_10 = arith.constant 0 : index
      %c0_11 = arith.constant 0 : index
      %12 = vector.load %arg7[%c0_10, %c0_11] : memref<256x128xf32, #tpu.memory_space<vmem>>, vector<256x128xf32>
      %c0_12 = arith.constant 0 : index
      %c0_13 = arith.constant 0 : index
      %13 = vector.load %arg4[%c0_12, %c0_13] : memref<1x128xf32, #tpu.memory_space<vmem>>, vector<1x128xf32>
      %14 = vector.broadcast %13 : vector<1x128xf32> to vector<256x128xf32>
      %15 = arith.addf %12, %14 : vector<256x128xf32>
      %c0_14 = arith.constant 0 : index
      %c0_15 = arith.constant 0 : index
      %16 = vector.load %arg5[%c0_14, %c0_15] : memref<256x128xf32, #tpu.memory_space<vmem>>, vector<256x128xf32>
      %17 = arith.addf %15, %16 : vector<256x128xf32>
      %cst_16 = arith.constant 0.000000e+00 : f32
      %18 = vector.broadcast %cst_16 : f32 to vector<256x128xf32>
      %19 = arith.maximumf %17, %18 : vector<256x128xf32>
      %c0_17 = arith.constant 0 : index
      %c0_18 = arith.constant 0 : index
      %20 = vector.load %arg6[%c0_17, %c0_18] : memref<256x128xf32, #tpu.memory_space<vmem>>, vector<256x128xf32>
      tpu.vector_store %arg6[%c0_17, %c0_18], %19 {strides = array<i32>} : memref<256x128xf32, #tpu.memory_space<vmem>>, vector<256x128xf32>,
    } else {
    }
    return
  }
  func.func @transform_0(%arg0: i32, %arg1: i32) -> (i32, i32) {
    %c0_i32 = arith.constant 0 : i32
    return %arg0, %arg1 : i32, i32
  }
  func.func @transform_1(%arg0: i32, %arg1: i32) -> (i32, i32) {
    %c0_i32 = arith.constant 0 : i32
    %c0_i32_0 = arith.constant 0 : i32
    return %arg1, %c0_i32 : i32, i32
  }
  func.func @transform_2(%arg0: i32, %arg1: i32) -> (i32, i32) {
    %c0_i32 = arith.constant 0 : i32
    %c0_i32_0 = arith.constant 0 : i32
    %c0_i32_1 = arith.constant 0 : i32
    return %c0_i32, %c0_i32_0 : i32, i32
  }
  func.func @transform_3(%arg0: i32, %arg1: i32) -> (i32, i32) {
    %c0_i32 = arith.constant 0 : i32
    %c0_i32_0 = arith.constant 0 : i32
    return %arg0, %c0_i32 : i32, i32
  }
  func.func @transform_4(%arg0: i32, %arg1: i32) -> (i32, i32) {
    %c0_i32 = arith.constant 0 : i32
    %c0_i32_0 = arith.constant 0 : i32
    return %arg0, %c0_i32 : i32, i32
  }
}

</mosaic_0001>

<bundles_post_ra>
// kernel: identity_block_forward.3
= control target key start
LH: loop header
LB: loop body
LE: loop exit
PB: predicated region body
PF: predicated region fallthrough
CT: control target
= control target key end

     0   :  { %s1251_s15 = smov 0   ;;  %s1253_s16 = smov 0   ;;  %s1439_s0 = inlined_call_operand.vmem [shape: bf16[512,36], index: 0, kind: input, shape index: {}]   ;;  %s1440_s1 = inlined_call_operand.vmem [shape: bf16[36,128], index: 1, kind: input, shape index: {}]   ;;  %s1441_s2 = inlined_call_operand.vmem [shape: f32[1,128], index: 2, kind: input, shape index: {}]   ;;  %s1442_s3 = inlined_call_operand.vmem [shape: f32[512,128], index: 3, kind: input, shape index: {}]   ;;  %s1443_s4 = inlined_call_operand.vmem [shape: f32[512,128], index: 4, kind: output, shape index: {}]  }
   0x1   :  { %s1255_s17 = smov 0  }
   0x2 LB: > { %s26_s18 = sadd.s32 1, %s1220_s16  ;;  %p1049_p0 = scmp.ge.s32.totalorder %s1224_s17, 1  ;;  %s1224_s17 = sphi %s1255_s17, %s14_s17   ;;  %s1220_s16 = sphi %s1253_s16, %s1445_s16   ;;  %s1216_s15 = sphi %s1251_s15, %s1444_s15  }
   0x3   : > { %p28_p1 = scmp.ge.s32.totalorder %s26_s18, 2  ;;  %p202_p2 = scmp.lt.s32.totalorder %s1224_s17, 3 }
   0x5   : > { %s1447_s18 = smov (%p28_p1, %s26_s18), 0  ;;  %p203_p3 = pnand %p1049_p0, %p202_p2 }
   0x6   : > { %v1183_v0 = vld [vmem:[%s1440_s1] sm:$0xff] (!%p203_p3)   ;;  %v1184_v1 = vld [vmem:[%s1440_s1 + $0x8] sm:$0xff] (!%p203_p3)   ;;  %s1050_s23 = sshll.u32 (!%p203_p3), %s1216_s15, 5  ;;  %v1185_v2 = vld [vmem:[%s1440_s1 + $0x10] ss:$0 sps:$4 sm:$0x33] (!%p203_p3)  }
   0x7   : > { %206 = sbr.rel (%p203_p3) target bundleno = 266 (0x10a), region = 36  ;;  %1113 = vmatprep.subr.bf16.mxu0 (!%p203_p3), %v1183_v0  ;;  %1151 = vmatprep.subr.bf16.mxu1 (!%p203_p3), %v1183_v0  ;;  %p242_p4 = scmp.lt.s32.totalorder (!%p203_p3), %s1050_s23, 63  ;;  %vm518_vm0 = vcmask (!%p203_p3), 1041408   ;;  %vm469_vm1 = vcmask (!%p203_p3), 293888   ;;  %v1327_v20 = vld [vmem:[%s1441_s2] ss:$0 sm:$0xff] (!%p203_p3) }
   0x8   : > { %1114 = vmatpush3.bf16.msra.mxu0 (!%p203_p3), %v1183_v0  ;;  %1154 = vmatpush3.bf16.msra.mxu1 (!%p203_p3), %v1183_v0  ;;  %v520_v3 = vsel (!%p203_p3), %vm518_vm0, %v1185_v2, 0 }
   0x9   : > { %1115 = vmatprep.subr.bf16.mxu0 (!%p203_p3), %v1184_v1  ;;  %1152 = vmatprep.subr.bf16.mxu1 (!%p203_p3), %v1184_v1 }
   0xc   : > { %1116 = vmatpush3.bf16.msra.mxu0 (!%p203_p3), %v1184_v1  ;;  %1155 = vmatpush3.bf16.msra.mxu1 (!%p203_p3), %v1184_v1 }
   0xd   : > { %1157 = vmatprep.subr.msk.bf16.mxu0 (!%p203_p3), %vm518_vm0, %v1185_v2  ;;  %1158 = vmatprep.subr.msk.bf16.mxu1 (!%p203_p3), %vm518_vm0, %v1185_v2 }
   0xe   : > { %s1449_s23 = smov (!%p242_p4, %s1050_s23), 63 }
   0xf   : > { %s1051_s26 = sshll.u32 %s1449_s23, 2  ;;  %s1053_s30 = sshll.u32 %s1449_s23, 3 }
  0x10   : > { %s1284_s29 = scalar_lea.vmem %s1439_s0, %s1051_s26  ;;  %1118 = vmatpush3.bf16.msra.mxu0 %v520_v3  ;;  %1156 = vmatpush3.bf16.msra.mxu1 %v520_v3  ;;  %s1322_s7 = scalar_lea.vmem %s1442_s3, %s1053_s30 }
  0x11   : > { %v1186_v4 = vld [vmem:[%s1284_s29] sm:$0xff]   ;;  %v1188_v6 = vld [vmem:[%s1284_s29 + $0x8] sm:$0xff]   ;;  %v1190_v8 = vld [vmem:[%s1284_s29 + $0x10] sm:$0xff]   ;;  %s1346_s12 = scalar_lea.vmem %s1443_s4, %s1053_s30 }
  0x12   : > { %v1187_v5 = vld [vmem:[%s1284_s29 + $0x40] sm:$0xff]   ;;  %1119 = vmatprep.mubr.msk.bf16.mxu0 %vm469_vm1, %v1186_v4  ;;  %v1189_v7 = vld [vmem:[%s1284_s29 + $0x48] sm:$0xff]   ;;  %v1191_v9 = vld [vmem:[%s1284_s29 + $0x50] sm:$0xff]  }
  0x13   : > { %1135 = vmatprep.mubr.msk.bf16.mxu1 %vm469_vm1, %v1187_v5  ;;  %1120 = vmatmul.mubr.msk.bf16.vlgmr.msra.gmra.mrb[0].mxu0 %vm469_vm1, %v1188_v6  ;;  %v1192_v10 = vld [vmem:[%s1284_s29 + $0x18] sm:$0xff]   ;;  %v1194_v12 = vld [vmem:[%s1284_s29 + $0x20] sm:$0xff]   ;;  %v1196_v14 = vld [vmem:[%s1284_s29 + $0x28] sm:$0xff]  }
  0x14   : > { %1136 = vmatmul.mubr.msk.bf16.vlgmr.msra.gmra.mrb[0].mxu1 %vm469_vm1, %v1189_v7  ;;  %1123 = vmatprep.mubr.msk.bf16.mxu0 %vm469_vm1, %v1190_v8  ;;  %v1193_v11 = vld [vmem:[%s1284_s29 + $0x58] sm:$0xff]   ;;  %v1195_v13 = vld [vmem:[%s1284_s29 + $0x60] sm:$0xff]   ;;  %v1197_v15 = vld [vmem:[%s1284_s29 + $0x68] sm:$0xff]  }
  0x15   : > { %1139 = vmatprep.mubr.msk.bf16.mxu1 %vm469_vm1, %v1191_v9  ;;  %v1198_v16 = vld [vmem:[%s1284_s29 + $0x30] sm:$0xff]   ;;  %v1200_v18 = vld [vmem:[%s1284_s29 + $0x38] sm:$0xff]   ;;  %v821_v28 = vld [vmem:[%s1322_s7] sm:$0xff] }
  0x16   : > { %v1199_v17 = vld [vmem:[%s1284_s29 + $0x70] sm:$0xff]   ;;  %v1201_v19 = vld [vmem:[%s1284_s29 + $0x78] sm:$0xff]   ;;  %v837_v30 = vld [vmem:[%s1322_s7 + $0x80] sm:$0xff] }
  0x17   : > { %v823_v22 = vld [vmem:[%s1322_s7 + $0x10] sm:$0xff]  ;;  %v824_v34 = vld [vmem:[%s1322_s7 + $0x18] sm:$0xff]  ;;  %v822_v42 = vld [vmem:[%s1322_s7 + $0x8] sm:$0xff] }
  0x18   : > { %v839_v24 = vld [vmem:[%s1322_s7 + $0x90] sm:$0xff]  ;;  %v840_v36 = vld [vmem:[%s1322_s7 + $0x98] sm:$0xff]  ;;  %v838_v44 = vld [vmem:[%s1322_s7 + $0x88] sm:$0xff] }
  0x19   : > { %v827_v62 = vld [vmem:[%s1322_s7 + $0x30] sm:$0xff]  ;;  %v825_v4 = vld [vmem:[%s1322_s7 + $0x20] sm:$0xff] }
  0x1a   : > { %v843_v0 = vld [vmem:[%s1322_s7 + $0xb0] sm:$0xff]  ;;  %v841_v6 = vld [vmem:[%s1322_s7 + $0xa0] sm:$0xff] }
  0x1b   : > { %1124 = vmatmul.mubr.msk.bf16.gmra.mrb[4].mxu0 %vm469_vm1, %v1192_v10  ;;  %v828_v10 = vld [vmem:[%s1322_s7 + $0x38] sm:$0xff] }
  0x1c   : > { %1140 = vmatmul.mubr.msk.bf16.gmra.mrb[4].mxu1 %vm469_vm1, %v1193_v11  ;;  %1127 = vmatprep.mubr.msk.bf16.mxu0 %vm469_vm1, %v1194_v12  ;;  %v844_v12 = vld [vmem:[%s1322_s7 + $0xb8] sm:$0xff] }
  0x1d   : > { %1143 = vmatprep.mubr.msk.bf16.mxu1 %vm469_vm1, %v1195_v13 }
  0x23   : > { %1128 = vmatmul.mubr.msk.bf16.gmra.mrb[8].mxu0 %vm469_vm1, %v1196_v14 }
  0x24   : > { %1144 = vmatmul.mubr.msk.bf16.gmra.mrb[8].mxu1 %vm469_vm1, %v1197_v15  ;;  %1131 = vmatprep.mubr.msk.bf16.mxu0 %vm469_vm1, %v1198_v16 }
  0x25   : > { %1147 = vmatprep.mubr.msk.bf16.mxu1 %vm469_vm1, %v1199_v17 }
  0x2b   : > { %1132 = vmatmul.mubr.msk.bf16.gmra.mrb[12].mxu0 %vm469_vm1, %v1200_v18  ;;  %v826_v18 = vld [vmem:[%s1322_s7 + $0x28] sm:$0xff] }
  0x2c   : > { %1148 = vmatmul.mubr.msk.bf16.gmra.mrb[12].mxu1 %vm469_vm1, %v1201_v19 }
  0xe6   : > { %v1121_v21 = vpop.f32.mrb[0].mxu0 }
  0xe7   : > { %v1137_v23 = vpop.f32.mrb[0].mxu1  ;;  %v791_v25 = vadd.f32 %v1121_v21, %v1327_v20  ;;  %v556_v27 = vpop.f32.mrb[1].mxu0  ;;  %v842_v21 = vld [vmem:[%s1322_s7 + $0xa8] sm:$0xff] }
  0xe8   : > { %v807_v26 = vadd.f32 %v1137_v23, %v1327_v20  ;;  %v620_v29 = vpop.f32.mrb[1].mxu1  ;;  %v789_v31 = vadd.f32 %v1327_v20, %v556_v27  ;;  %v1122_v33 = vpop.f32.mrb[2].mxu0 }
  0xe9   : > { %v805_v32 = vadd.f32 %v1327_v20, %v620_v29  ;;  %v1138_v35 = vpop.f32.mrb[2].mxu1  ;;  %v855_v37 = vadd.f32 %v823_v22, %v791_v25  ;;  %v792_v39 = vadd.f32 %v1122_v33, %v1327_v20  ;;  %v559_v41 = vpop.f32.mrb[3].mxu0 }
  0xea   : > { %v871_v38 = vadd.f32 %v839_v24, %v807_v26  ;;  %v808_v40 = vadd.f32 %v1138_v35, %v1327_v20  ;;  %v623_v43 = vpop.f32.mrb[3].mxu1  ;;  %v853_v45 = vadd.f32 %v821_v28, %v789_v31  ;;  %v790_v47 = vadd.f32 %v1327_v20, %v559_v41  ;;  %v847_v41 = vld [vmem:[%s1322_s7 + $0xd0] sm:$0xff] }
  0xeb   : > { %v869_v46 = vadd.f32 %v837_v30, %v805_v32  ;;  %v806_v48 = vadd.f32 %v1327_v20, %v623_v43  ;;  %v887_v49 = vmax.f32 %v855_v37, 0.0  ;;  %v856_v51 = vadd.f32 %v824_v34, %v792_v39  ;;  %v831_v39 = vld [vmem:[%s1322_s7 + $0x50] sm:$0xff] }
  0xec   : > { %v903_v50 = vmax.f32 %v871_v38, 0.0  ;;  %v872_v52 = vadd.f32 %v840_v36, %v808_v40  ;;  %v885_v53 = vmax.f32 %v853_v45, 0.0  ;;  %v854_v55 = vadd.f32 %v822_v42, %v790_v47  ;;  %v829_v45 = vld [vmem:[%s1322_s7 + $0x40] sm:$0xff] }
  0xed   : > { %v901_v54 = vmax.f32 %v869_v46, 0.0  ;;  %v870_v56 = vadd.f32 %v838_v44, %v806_v48  ;;  %919 = vst [vmem:[%s1346_s12 + $0x10] sm:$0xff] %v887_v49  ;;  %v888_v57 = vmax.f32 %v856_v51, 0.0  ;;  %v845_v47 = vld [vmem:[%s1322_s7 + $0xc0] sm:$0xff]  ;;  %v832_v51 = vld [vmem:[%s1322_s7 + $0x58] sm:$0xff] }
  0xee   : > { %935 = vst [vmem:[%s1346_s12 + $0x90] sm:$0xff] %v903_v50  ;;  %v904_v58 = vmax.f32 %v872_v52, 0.0  ;;  %917 = vst [vmem:[%s1346_s12] sm:$0xff] %v885_v53  ;;  %v886_v59 = vmax.f32 %v854_v55, 0.0  ;;  %v1125_v61 = vpop.f32.mrb[4].mxu0  ;;  %v848_v53 = vld [vmem:[%s1322_s7 + $0xd8] sm:$0xff] }
  0xef   : > { %933 = vst [vmem:[%s1346_s12 + $0x80] sm:$0xff] %v901_v54  ;;  %v902_v60 = vmax.f32 %v870_v56, 0.0  ;;  %v1141_v63 = vpop.f32.mrb[4].mxu1  ;;  %920 = vst [vmem:[%s1346_s12 + $0x18] sm:$0xff] %v888_v57  ;;  %v795_v1 = vadd.f32 %v1125_v61, %v1327_v20  ;;  %v572_v3 = vpop.f32.mrb[5].mxu0  ;;  %v846_v61 = vld [vmem:[%s1322_s7 + $0xc8] sm:$0xff] }
  0xf0   : > { %936 = vst [vmem:[%s1346_s12 + $0x98] sm:$0xff] %v904_v58  ;;  %v811_v2 = vadd.f32 %v1141_v63, %v1327_v20  ;;  %v636_v5 = vpop.f32.mrb[5].mxu1  ;;  %918 = vst [vmem:[%s1346_s12 + $0x8] sm:$0xff] %v886_v59  ;;  %v793_v7 = vadd.f32 %v1327_v20, %v572_v3  ;;  %v1126_v9 = vpop.f32.mrb[6].mxu0  ;;  %v830_v59 = vld [vmem:[%s1322_s7 + $0x48] sm:$0xff] }
  0xf1   : > { %934 = vst [vmem:[%s1346_s12 + $0x88] sm:$0xff] %v902_v60  ;;  %v809_v8 = vadd.f32 %v1327_v20, %v636_v5  ;;  %v1142_v11 = vpop.f32.mrb[6].mxu1  ;;  %v859_v13 = vadd.f32 %v827_v62, %v795_v1  ;;  %v796_v15 = vadd.f32 %v1126_v9, %v1327_v20  ;;  %v575_v17 = vpop.f32.mrb[7].mxu0 }
  0xf2   : > { %v875_v14 = vadd.f32 %v843_v0, %v811_v2  ;;  %v812_v16 = vadd.f32 %v1142_v11, %v1327_v20  ;;  %v639_v19 = vpop.f32.mrb[7].mxu1  ;;  %v857_v22 = vadd.f32 %v825_v4, %v793_v7  ;;  %v794_v24 = vadd.f32 %v1327_v20, %v575_v17  ;;  %v851_v17 = vld [vmem:[%s1322_s7 + $0xf0] sm:$0xff] }
  0xf3   : > { %v873_v23 = vadd.f32 %v841_v6, %v809_v8  ;;  %v810_v25 = vadd.f32 %v1327_v20, %v639_v19  ;;  %v891_v26 = vmax.f32 %v859_v13, 0.0  ;;  %v860_v28 = vadd.f32 %v828_v10, %v796_v15  ;;  %v835_v15 = vld [vmem:[%s1322_s7 + $0x70] sm:$0xff] }
  0xf4   : > { %v907_v27 = vmax.f32 %v875_v14, 0.0  ;;  %v876_v29 = vadd.f32 %v844_v12, %v812_v16  ;;  %v889_v30 = vmax.f32 %v857_v22, 0.0  ;;  %v858_v32 = vadd.f32 %v826_v18, %v794_v24  ;;  %v833_v22 = vld [vmem:[%s1322_s7 + $0x60] sm:$0xff] }
  0xf5   : > { %v905_v31 = vmax.f32 %v873_v23, 0.0  ;;  %v874_v33 = vadd.f32 %v842_v21, %v810_v25  ;;  %923 = vst [vmem:[%s1346_s12 + $0x30] sm:$0xff] %v891_v26  ;;  %v892_v34 = vmax.f32 %v860_v28, 0.0  ;;  %v849_v24 = vld [vmem:[%s1322_s7 + $0xe0] sm:$0xff]  ;;  %v836_v28 = vld [vmem:[%s1322_s7 + $0x78] sm:$0xff] }
  0xf6   : > { %939 = vst [vmem:[%s1346_s12 + $0xb0] sm:$0xff] %v907_v27  ;;  %v908_v35 = vmax.f32 %v876_v29, 0.0  ;;  %921 = vst [vmem:[%s1346_s12 + $0x20] sm:$0xff] %v889_v30  ;;  %v890_v36 = vmax.f32 %v858_v32, 0.0  ;;  %v1129_v38 = vpop.f32.mrb[8].mxu0  ;;  %v852_v30 = vld [vmem:[%s1322_s7 + $0xf8] sm:$0xff] }
  0xf7   : > { %937 = vst [vmem:[%s1346_s12 + $0xa0] sm:$0xff] %v905_v31  ;;  %v906_v37 = vmax.f32 %v874_v33, 0.0  ;;  %v1145_v40 = vpop.f32.mrb[8].mxu1  ;;  %924 = vst [vmem:[%s1346_s12 + $0x38] sm:$0xff] %v892_v34  ;;  %v799_v42 = vadd.f32 %v1129_v38, %v1327_v20  ;;  %v588_v44 = vpop.f32.mrb[9].mxu0  ;;  %v850_v38 = vld [vmem:[%s1322_s7 + $0xe8] sm:$0xff] }
  0xf8   : > { %940 = vst [vmem:[%s1346_s12 + $0xb8] sm:$0xff] %v908_v35  ;;  %v815_v43 = vadd.f32 %v1145_v40, %v1327_v20  ;;  %v652_v46 = vpop.f32.mrb[9].mxu1  ;;  %922 = vst [vmem:[%s1346_s12 + $0x28] sm:$0xff] %v890_v36  ;;  %v797_v48 = vadd.f32 %v1327_v20, %v588_v44  ;;  %v1130_v50 = vpop.f32.mrb[10].mxu0  ;;  %v834_v36 = vld [vmem:[%s1322_s7 + $0x68] sm:$0xff] }
  0xf9   : > { %938 = vst [vmem:[%s1346_s12 + $0xa8] sm:$0xff] %v906_v37  ;;  %v813_v49 = vadd.f32 %v1327_v20, %v652_v46  ;;  %v1146_v52 = vpop.f32.mrb[10].mxu1  ;;  %v863_v54 = vadd.f32 %v831_v39, %v799_v42  ;;  %v800_v56 = vadd.f32 %v1130_v50, %v1327_v20  ;;  %v591_v58 = vpop.f32.mrb[11].mxu0 }
  0xfa   : > { %v879_v55 = vadd.f32 %v847_v41, %v815_v43  ;;  %v816_v57 = vadd.f32 %v1146_v52, %v1327_v20  ;;  %v655_v60 = vpop.f32.mrb[11].mxu1  ;;  %v861_v62 = vadd.f32 %v829_v45, %v797_v48  ;;  %v798_v0 = vadd.f32 %v1327_v20, %v591_v58 }
  0xfb   : > { %v877_v63 = vadd.f32 %v845_v47, %v813_v49  ;;  %v814_v1 = vadd.f32 %v1327_v20, %v655_v60  ;;  %v895_v2 = vmax.f32 %v863_v54, 0.0  ;;  %v864_v4 = vadd.f32 %v832_v51, %v800_v56 }
  0xfc   : > { %v911_v3 = vmax.f32 %v879_v55, 0.0  ;;  %v880_v5 = vadd.f32 %v848_v53, %v816_v57  ;;  %v893_v6 = vmax.f32 %v861_v62, 0.0  ;;  %v862_v8 = vadd.f32 %v830_v59, %v798_v0 }
  0xfd   : > { %v909_v7 = vmax.f32 %v877_v63, 0.0  ;;  %v878_v9 = vadd.f32 %v846_v61, %v814_v1  ;;  %927 = vst [vmem:[%s1346_s12 + $0x50] sm:$0xff] %v895_v2  ;;  %v896_v10 = vmax.f32 %v864_v4, 0.0 }
  0xfe   : > { %943 = vst [vmem:[%s1346_s12 + $0xd0] sm:$0xff] %v911_v3  ;;  %v912_v11 = vmax.f32 %v880_v5, 0.0  ;;  %925 = vst [vmem:[%s1346_s12 + $0x40] sm:$0xff] %v893_v6  ;;  %v894_v12 = vmax.f32 %v862_v8, 0.0  ;;  %v1133_v14 = vpop.f32.mrb[12].mxu0 }
  0xff   : > { %941 = vst [vmem:[%s1346_s12 + $0xc0] sm:$0xff] %v909_v7  ;;  %v910_v13 = vmax.f32 %v878_v9, 0.0  ;;  %v1149_v16 = vpop.f32.mrb[12].mxu1  ;;  %928 = vst [vmem:[%s1346_s12 + $0x58] sm:$0xff] %v896_v10  ;;  %v803_v18 = vadd.f32 %v1133_v14, %v1327_v20  ;;  %v604_v21 = vpop.f32.mrb[13].mxu0 }
 0x100   : > { %944 = vst [vmem:[%s1346_s12 + $0xd8] sm:$0xff] %v912_v11  ;;  %v819_v19 = vadd.f32 %v1149_v16, %v1327_v20  ;;  %v668_v23 = vpop.f32.mrb[13].mxu1  ;;  %926 = vst [vmem:[%s1346_s12 + $0x48] sm:$0xff] %v894_v12  ;;  %v801_v25 = vadd.f32 %v1327_v20, %v604_v21  ;;  %v1134_v27 = vpop.f32.mrb[14].mxu0 }
 0x101   : > { %942 = vst [vmem:[%s1346_s12 + $0xc8] sm:$0xff] %v910_v13  ;;  %v817_v26 = vadd.f32 %v1327_v20, %v668_v23  ;;  %v1150_v29 = vpop.f32.mrb[14].mxu1  ;;  %v867_v31 = vadd.f32 %v835_v15, %v803_v18  ;;  %v804_v33 = vadd.f32 %v1134_v27, %v1327_v20  ;;  %v607_v35 = vpop.f32.mrb[15].mxu0 }
 0x102   : > { %v883_v32 = vadd.f32 %v851_v17, %v819_v19  ;;  %v820_v34 = vadd.f32 %v1150_v29, %v1327_v20  ;;  %v671_v37 = vpop.f32.mrb[15].mxu1  ;;  %v865_v39 = vadd.f32 %v833_v22, %v801_v25  ;;  %v802_v41 = vadd.f32 %v1327_v20, %v607_v35 }
 0x103   : > { %v881_v40 = vadd.f32 %v849_v24, %v817_v26  ;;  %v818_v42 = vadd.f32 %v1327_v20, %v671_v37  ;;  %v899_v43 = vmax.f32 %v867_v31, 0.0  ;;  %v868_v45 = vadd.f32 %v836_v28, %v804_v33 }
 0x104   : > { %v915_v44 = vmax.f32 %v883_v32, 0.0  ;;  %v884_v46 = vadd.f32 %v852_v30, %v820_v34  ;;  %v897_v47 = vmax.f32 %v865_v39, 0.0  ;;  %v866_v49 = vadd.f32 %v834_v36, %v802_v41 }
 0x105   : > { %v913_v48 = vmax.f32 %v881_v40, 0.0  ;;  %v882_v50 = vadd.f32 %v850_v38, %v818_v42  ;;  %931 = vst [vmem:[%s1346_s12 + $0x70] sm:$0xff] %v899_v43  ;;  %v900_v51 = vmax.f32 %v868_v45, 0.0 }
 0x106   : > { %947 = vst [vmem:[%s1346_s12 + $0xf0] sm:$0xff] %v915_v44  ;;  %v916_v52 = vmax.f32 %v884_v46, 0.0  ;;  %929 = vst [vmem:[%s1346_s12 + $0x60] sm:$0xff] %v897_v47  ;;  %v898_v53 = vmax.f32 %v866_v49, 0.0 }
 0x107   : > { %945 = vst [vmem:[%s1346_s12 + $0xe0] sm:$0xff] %v913_v48  ;;  %v914_v20 = vmax.f32 %v882_v50, 0.0  ;;  %932 = vst [vmem:[%s1346_s12 + $0x78] sm:$0xff] %v900_v51 }
 0x108   : > { %948 = vst [vmem:[%s1346_s12 + $0xf8] sm:$0xff] %v916_v52  ;;  %930 = vst [vmem:[%s1346_s12 + $0x68] sm:$0xff] %v898_v53 }
 0x109   : > { %946 = vst [vmem:[%s1346_s12 + $0xe8] sm:$0xff] %v914_v20 }
 0x10a PF: > { %s14_s17 = sadd.s32 1, %s1224_s17   ;;  %s1444_s15 = smov %s1220_s16 }
 0x10b   : > { %p11_p5 = scmp.ge.s32.totalorder %s14_s17, 4   ;;  %s1445_s16 = smov %s1447_s18 }
 0x10d   :  { %13 = sbr.rel (!%p11_p5) target bundleno = 2 (0x2), region = 80 }

// kernel: identity_block_forward.2
= control target key start
LH: loop header
LB: loop body
LE: loop exit
PB: predicated region body
PF: predicated region fallthrough
CT: control target
= control target key end

     0   :  { %s1119_s12 = smov 0   ;;  %s1121_s13 = smov 0   ;;  %s1270_s0 = inlined_call_operand.vmem [shape: bf16[512,36], index: 0, kind: input, shape index: {}]   ;;  %s1271_s1 = inlined_call_operand.vmem [shape: bf16[36,128], index: 1, kind: input, shape index: {}]   ;;  %s1272_s2 = inlined_call_operand.vmem [shape: f32[1,128], index: 2, kind: input, shape index: {}]   ;;  %s1273_s3 = inlined_call_operand.vmem [shape: f32[512,128], index: 3, kind: output, shape index: {}]  }
   0x1   :  { %s1123_s14 = smov 0  }
   0x2 LB: > { %s25_s15 = sadd.s32 1, %s1093_s13  ;;  %p924_p0 = scmp.ge.s32.totalorder %s1097_s14, 1  ;;  %s1097_s14 = sphi %s1123_s14, %s13_s14   ;;  %s1093_s13 = sphi %s1121_s13, %s1275_s13   ;;  %s1089_s12 = sphi %s1119_s12, %s1274_s12  }
   0x3   : > { %p27_p1 = scmp.ge.s32.totalorder %s25_s15, 2  ;;  %p166_p2 = scmp.lt.s32.totalorder %s1097_s14, 3 }
   0x5   : > { %s1277_s15 = smov (%p27_p1, %s25_s15), 0  ;;  %p167_p3 = pnand %p924_p0, %p166_p2 }
   0x6   : > { %v1056_v0 = vld [vmem:[%s1271_s1] sm:$0xff] (!%p167_p3)   ;;  %v1057_v1 = vld [vmem:[%s1271_s1 + $0x8] sm:$0xff] (!%p167_p3)   ;;  %s925_s20 = sshll.u32 (!%p167_p3), %s1089_s12, 5  ;;  %v1058_v2 = vld [vmem:[%s1271_s1 + $0x10] ss:$0 sps:$4 sm:$0x33] (!%p167_p3)  }
   0x7   : > { %170 = sbr.rel (%p167_p3) target bundleno = 264 (0x108), region = 32  ;;  %986 = vmatprep.subr.bf16.mxu0 (!%p167_p3), %v1056_v0  ;;  %1024 = vmatprep.subr.bf16.mxu1 (!%p167_p3), %v1056_v0  ;;  %p199_p4 = scmp.lt.s32.totalorder (!%p167_p3), %s925_s20, 63  ;;  %vm469_vm0 = vcmask (!%p167_p3), 1041408   ;;  %vm420_vm1 = vcmask (!%p167_p3), 293888   ;;  %v1189_v20 = vld [vmem:[%s1272_s2] ss:$0 sm:$0xff] (!%p167_p3) }
   0x8   : > { %987 = vmatpush3.bf16.msra.mxu0 (!%p167_p3), %v1056_v0  ;;  %1027 = vmatpush3.bf16.msra.mxu1 (!%p167_p3), %v1056_v0  ;;  %v471_v3 = vsel (!%p167_p3), %vm469_vm0, %v1058_v2, 0 }
   0x9   : > { %988 = vmatprep.subr.bf16.mxu0 (!%p167_p3), %v1057_v1  ;;  %1025 = vmatprep.subr.bf16.mxu1 (!%p167_p3), %v1057_v1 }
   0xc   : > { %989 = vmatpush3.bf16.msra.mxu0 (!%p167_p3), %v1057_v1  ;;  %1028 = vmatpush3.bf16.msra.mxu1 (!%p167_p3), %v1057_v1 }
   0xd   : > { %1030 = vmatprep.subr.msk.bf16.mxu0 (!%p167_p3), %vm469_vm0, %v1058_v2  ;;  %1031 = vmatprep.subr.msk.bf16.mxu1 (!%p167_p3), %vm469_vm0, %v1058_v2 }
   0xe   : > { %s1279_s20 = smov (!%p199_p4, %s925_s20), 63 }
   0xf   : > { %s926_s23 = sshll.u32 %s1279_s20, 2  ;;  %s928_s29 = sshll.u32 %s1279_s20, 3 }
  0x10   : > { %s1152_s26 = scalar_lea.vmem %s1270_s0, %s926_s23  ;;  %991 = vmatpush3.bf16.msra.mxu0 %v471_v3  ;;  %1029 = vmatpush3.bf16.msra.mxu1 %v471_v3  ;;  %s1197_s5 = scalar_lea.vmem %s1273_s3, %s928_s29 }
  0x11   : > { %v1059_v4 = vld [vmem:[%s1152_s26] sm:$0xff]   ;;  %v1061_v6 = vld [vmem:[%s1152_s26 + $0x8] sm:$0xff]   ;;  %v1063_v8 = vld [vmem:[%s1152_s26 + $0x10] sm:$0xff]  }
  0x12   : > { %v1060_v5 = vld [vmem:[%s1152_s26 + $0x40] sm:$0xff]   ;;  %992 = vmatprep.mubr.msk.bf16.mxu0 %vm420_vm1, %v1059_v4  ;;  %v1062_v7 = vld [vmem:[%s1152_s26 + $0x48] sm:$0xff]   ;;  %v1064_v9 = vld [vmem:[%s1152_s26 + $0x50] sm:$0xff]  }
  0x13   : > { %1008 = vmatprep.mubr.msk.bf16.mxu1 %vm420_vm1, %v1060_v5  ;;  %993 = vmatmul.mubr.msk.bf16.vlgmr.msra.gmra.mrb[0].mxu0 %vm420_vm1, %v1061_v6  ;;  %v1065_v10 = vld [vmem:[%s1152_s26 + $0x18] sm:$0xff]   ;;  %v1067_v12 = vld [vmem:[%s1152_s26 + $0x20] sm:$0xff]   ;;  %v1069_v14 = vld [vmem:[%s1152_s26 + $0x28] sm:$0xff]  }
  0x14   : > { %1009 = vmatmul.mubr.msk.bf16.vlgmr.msra.gmra.mrb[0].mxu1 %vm420_vm1, %v1062_v7  ;;  %996 = vmatprep.mubr.msk.bf16.mxu0 %vm420_vm1, %v1063_v8  ;;  %v1066_v11 = vld [vmem:[%s1152_s26 + $0x58] sm:$0xff]   ;;  %v1068_v13 = vld [vmem:[%s1152_s26 + $0x60] sm:$0xff]   ;;  %v1070_v15 = vld [vmem:[%s1152_s26 + $0x68] sm:$0xff]  }
  0x15   : > { %1012 = vmatprep.mubr.msk.bf16.mxu1 %vm420_vm1, %v1064_v9  ;;  %v1071_v16 = vld [vmem:[%s1152_s26 + $0x30] sm:$0xff]   ;;  %v1073_v18 = vld [vmem:[%s1152_s26 + $0x38] sm:$0xff]  }
  0x16   : > { %v1072_v17 = vld [vmem:[%s1152_s26 + $0x70] sm:$0xff]   ;;  %v1074_v19 = vld [vmem:[%s1152_s26 + $0x78] sm:$0xff]  }
  0x1b   : > { %997 = vmatmul.mubr.msk.bf16.gmra.mrb[4].mxu0 %vm420_vm1, %v1065_v10 }
  0x1c   : > { %1013 = vmatmul.mubr.msk.bf16.gmra.mrb[4].mxu1 %vm420_vm1, %v1066_v11  ;;  %1000 = vmatprep.mubr.msk.bf16.mxu0 %vm420_vm1, %v1067_v12 }
  0x1d   : > { %1016 = vmatprep.mubr.msk.bf16.mxu1 %vm420_vm1, %v1068_v13 }
  0x23   : > { %1001 = vmatmul.mubr.msk.bf16.gmra.mrb[8].mxu0 %vm420_vm1, %v1069_v14 }
  0x24   : > { %1017 = vmatmul.mubr.msk.bf16.gmra.mrb[8].mxu1 %vm420_vm1, %v1070_v15  ;;  %1004 = vmatprep.mubr.msk.bf16.mxu0 %vm420_vm1, %v1071_v16 }
  0x25   : > { %1020 = vmatprep.mubr.msk.bf16.mxu1 %vm420_vm1, %v1072_v17 }
  0x2b   : > { %1005 = vmatmul.mubr.msk.bf16.gmra.mrb[12].mxu0 %vm420_vm1, %v1073_v18 }
  0x2c   : > { %1021 = vmatmul.mubr.msk.bf16.gmra.mrb[12].mxu1 %vm420_vm1, %v1074_v19 }
  0xe6   : > { %v994_v21 = vpop.f32.mrb[0].mxu0 }
  0xe7   : > { %v1010_v22 = vpop.f32.mrb[0].mxu1  ;;  %v742_v23 = vadd.f32 %v994_v21, %v1189_v20  ;;  %v507_v25 = vpop.f32.mrb[1].mxu0 }
  0xe8   : > { %v758_v24 = vadd.f32 %v1010_v22, %v1189_v20  ;;  %v571_v26 = vpop.f32.mrb[1].mxu1  ;;  %v740_v27 = vadd.f32 %v1189_v20, %v507_v25  ;;  %v995_v29 = vpop.f32.mrb[2].mxu0 }
  0xe9   : > { %v756_v28 = vadd.f32 %v1189_v20, %v571_v26  ;;  %v1011_v30 = vpop.f32.mrb[2].mxu1  ;;  %v774_v31 = vmax.f32 %v742_v23, 0.0  ;;  %v743_v33 = vadd.f32 %v995_v29, %v1189_v20  ;;  %v510_v35 = vpop.f32.mrb[3].mxu0 }
  0xea   : > { %v790_v32 = vmax.f32 %v758_v24, 0.0  ;;  %v759_v34 = vadd.f32 %v1011_v30, %v1189_v20  ;;  %v574_v36 = vpop.f32.mrb[3].mxu1  ;;  %v772_v37 = vmax.f32 %v740_v27, 0.0  ;;  %v741_v39 = vadd.f32 %v1189_v20, %v510_v35 }
  0xeb   : > { %v788_v38 = vmax.f32 %v756_v28, 0.0  ;;  %v757_v40 = vadd.f32 %v1189_v20, %v574_v36  ;;  %806 = vst [vmem:[%s1197_s5 + $0x10] sm:$0xff] %v774_v31  ;;  %v775_v41 = vmax.f32 %v743_v33, 0.0 }
  0xec   : > { %822 = vst [vmem:[%s1197_s5 + $0x90] sm:$0xff] %v790_v32  ;;  %v791_v42 = vmax.f32 %v759_v34, 0.0  ;;  %804 = vst [vmem:[%s1197_s5] sm:$0xff] %v772_v37  ;;  %v773_v43 = vmax.f32 %v741_v39, 0.0 }
  0xed   : > { %820 = vst [vmem:[%s1197_s5 + $0x80] sm:$0xff] %v788_v38  ;;  %v789_v44 = vmax.f32 %v757_v40, 0.0  ;;  %807 = vst [vmem:[%s1197_s5 + $0x18] sm:$0xff] %v775_v41 }
  0xee   : > { %823 = vst [vmem:[%s1197_s5 + $0x98] sm:$0xff] %v791_v42  ;;  %805 = vst [vmem:[%s1197_s5 + $0x8] sm:$0xff] %v773_v43  ;;  %v998_v45 = vpop.f32.mrb[4].mxu0 }
  0xef   : > { %821 = vst [vmem:[%s1197_s5 + $0x88] sm:$0xff] %v789_v44  ;;  %v1014_v46 = vpop.f32.mrb[4].mxu1  ;;  %v746_v47 = vadd.f32 %v998_v45, %v1189_v20  ;;  %v523_v49 = vpop.f32.mrb[5].mxu0 }
  0xf0   : > { %v762_v48 = vadd.f32 %v1014_v46, %v1189_v20  ;;  %v587_v50 = vpop.f32.mrb[5].mxu1  ;;  %v744_v51 = vadd.f32 %v1189_v20, %v523_v49  ;;  %v999_v53 = vpop.f32.mrb[6].mxu0 }
  0xf1   : > { %v760_v52 = vadd.f32 %v1189_v20, %v587_v50  ;;  %v1015_v54 = vpop.f32.mrb[6].mxu1  ;;  %v778_v55 = vmax.f32 %v746_v47, 0.0  ;;  %v747_v57 = vadd.f32 %v999_v53, %v1189_v20  ;;  %v526_v59 = vpop.f32.mrb[7].mxu0 }
  0xf2   : > { %v794_v56 = vmax.f32 %v762_v48, 0.0  ;;  %v763_v58 = vadd.f32 %v1015_v54, %v1189_v20  ;;  %v590_v60 = vpop.f32.mrb[7].mxu1  ;;  %v776_v61 = vmax.f32 %v744_v51, 0.0  ;;  %v745_v63 = vadd.f32 %v1189_v20, %v526_v59 }
  0xf3   : > { %v792_v62 = vmax.f32 %v760_v52, 0.0  ;;  %v761_v0 = vadd.f32 %v1189_v20, %v590_v60  ;;  %810 = vst [vmem:[%s1197_s5 + $0x30] sm:$0xff] %v778_v55  ;;  %v779_v1 = vmax.f32 %v747_v57, 0.0 }
  0xf4   : > { %826 = vst [vmem:[%s1197_s5 + $0xb0] sm:$0xff] %v794_v56  ;;  %v795_v2 = vmax.f32 %v763_v58, 0.0  ;;  %808 = vst [vmem:[%s1197_s5 + $0x20] sm:$0xff] %v776_v61  ;;  %v777_v3 = vmax.f32 %v745_v63, 0.0 }
  0xf5   : > { %824 = vst [vmem:[%s1197_s5 + $0xa0] sm:$0xff] %v792_v62  ;;  %v793_v4 = vmax.f32 %v761_v0, 0.0  ;;  %811 = vst [vmem:[%s1197_s5 + $0x38] sm:$0xff] %v779_v1 }
  0xf6   : > { %827 = vst [vmem:[%s1197_s5 + $0xb8] sm:$0xff] %v795_v2  ;;  %809 = vst [vmem:[%s1197_s5 + $0x28] sm:$0xff] %v777_v3  ;;  %v1002_v5 = vpop.f32.mrb[8].mxu0 }
  0xf7   : > { %825 = vst [vmem:[%s1197_s5 + $0xa8] sm:$0xff] %v793_v4  ;;  %v1018_v6 = vpop.f32.mrb[8].mxu1  ;;  %v750_v7 = vadd.f32 %v1002_v5, %v1189_v20  ;;  %v539_v9 = vpop.f32.mrb[9].mxu0 }
  0xf8   : > { %v766_v8 = vadd.f32 %v1018_v6, %v1189_v20  ;;  %v603_v10 = vpop.f32.mrb[9].mxu1  ;;  %v748_v11 = vadd.f32 %v1189_v20, %v539_v9  ;;  %v1003_v13 = vpop.f32.mrb[10].mxu0 }
  0xf9   : > { %v764_v12 = vadd.f32 %v1189_v20, %v603_v10  ;;  %v1019_v14 = vpop.f32.mrb[10].mxu1  ;;  %v782_v15 = vmax.f32 %v750_v7, 0.0  ;;  %v751_v17 = vadd.f32 %v1003_v13, %v1189_v20  ;;  %v542_v19 = vpop.f32.mrb[11].mxu0 }
  0xfa   : > { %v798_v16 = vmax.f32 %v766_v8, 0.0  ;;  %v767_v18 = vadd.f32 %v1019_v14, %v1189_v20  ;;  %v606_v21 = vpop.f32.mrb[11].mxu1  ;;  %v780_v22 = vmax.f32 %v748_v11, 0.0  ;;  %v749_v24 = vadd.f32 %v1189_v20, %v542_v19 }
  0xfb   : > { %v796_v23 = vmax.f32 %v764_v12, 0.0  ;;  %v765_v25 = vadd.f32 %v1189_v20, %v606_v21  ;;  %814 = vst [vmem:[%s1197_s5 + $0x50] sm:$0xff] %v782_v15  ;;  %v783_v26 = vmax.f32 %v751_v17, 0.0 }
  0xfc   : > { %830 = vst [vmem:[%s1197_s5 + $0xd0] sm:$0xff] %v798_v16  ;;  %v799_v27 = vmax.f32 %v767_v18, 0.0  ;;  %812 = vst [vmem:[%s1197_s5 + $0x40] sm:$0xff] %v780_v22  ;;  %v781_v28 = vmax.f32 %v749_v24, 0.0 }
  0xfd   : > { %828 = vst [vmem:[%s1197_s5 + $0xc0] sm:$0xff] %v796_v23  ;;  %v797_v29 = vmax.f32 %v765_v25, 0.0  ;;  %815 = vst [vmem:[%s1197_s5 + $0x58] sm:$0xff] %v783_v26 }
  0xfe   : > { %831 = vst [vmem:[%s1197_s5 + $0xd8] sm:$0xff] %v799_v27  ;;  %813 = vst [vmem:[%s1197_s5 + $0x48] sm:$0xff] %v781_v28  ;;  %v1006_v30 = vpop.f32.mrb[12].mxu0 }
  0xff   : > { %829 = vst [vmem:[%s1197_s5 + $0xc8] sm:$0xff] %v797_v29  ;;  %v1022_v31 = vpop.f32.mrb[12].mxu1  ;;  %v754_v32 = vadd.f32 %v1006_v30, %v1189_v20  ;;  %v555_v34 = vpop.f32.mrb[13].mxu0 }
 0x100   : > { %v770_v33 = vadd.f32 %v1022_v31, %v1189_v20  ;;  %v619_v35 = vpop.f32.mrb[13].mxu1  ;;  %v752_v36 = vadd.f32 %v1189_v20, %v555_v34  ;;  %v1007_v38 = vpop.f32.mrb[14].mxu0 }
 0x101   : > { %v768_v37 = vadd.f32 %v1189_v20, %v619_v35  ;;  %v1023_v39 = vpop.f32.mrb[14].mxu1  ;;  %v786_v40 = vmax.f32 %v754_v32, 0.0  ;;  %v755_v42 = vadd.f32 %v1007_v38, %v1189_v20  ;;  %v558_v44 = vpop.f32.mrb[15].mxu0 }
 0x102   : > { %v802_v41 = vmax.f32 %v770_v33, 0.0  ;;  %v771_v43 = vadd.f32 %v1023_v39, %v1189_v20  ;;  %v622_v45 = vpop.f32.mrb[15].mxu1  ;;  %v784_v46 = vmax.f32 %v752_v36, 0.0  ;;  %v753_v48 = vadd.f32 %v1189_v20, %v558_v44 }
 0x103   : > { %v800_v47 = vmax.f32 %v768_v37, 0.0  ;;  %v769_v49 = vadd.f32 %v1189_v20, %v622_v45  ;;  %818 = vst [vmem:[%s1197_s5 + $0x70] sm:$0xff] %v786_v40  ;;  %v787_v50 = vmax.f32 %v755_v42, 0.0 }
 0x104   : > { %834 = vst [vmem:[%s1197_s5 + $0xf0] sm:$0xff] %v802_v41  ;;  %v803_v51 = vmax.f32 %v771_v43, 0.0  ;;  %816 = vst [vmem:[%s1197_s5 + $0x60] sm:$0xff] %v784_v46  ;;  %v785_v52 = vmax.f32 %v753_v48, 0.0 }
 0x105   : > { %832 = vst [vmem:[%s1197_s5 + $0xe0] sm:$0xff] %v800_v47  ;;  %v801_v53 = vmax.f32 %v769_v49, 0.0  ;;  %819 = vst [vmem:[%s1197_s5 + $0x78] sm:$0xff] %v787_v50 }
 0x106   : > { %835 = vst [vmem:[%s1197_s5 + $0xf8] sm:$0xff] %v803_v51  ;;  %817 = vst [vmem:[%s1197_s5 + $0x68] sm:$0xff] %v785_v52 }
 0x107   : > { %833 = vst [vmem:[%s1197_s5 + $0xe8] sm:$0xff] %v801_v53 }
 0x108 PF: > { %s13_s14 = sadd.s32 1, %s1097_s14   ;;  %s1274_s12 = smov %s1093_s13 }
 0x109   : > { %p10_p5 = scmp.ge.s32.totalorder %s13_s14, 4   ;;  %s1275_s13 = smov %s1277_s15 }
 0x10b   :  { %12 = sbr.rel (!%p10_p5) target bundleno = 2 (0x2), region = 73 }

</bundles_post_ra>
